<compile_context>
chip_gen: v5e
topology: v5e:2x2
jax: 0.10.0
libtpu: 0.0.40
codegen_flags: <defaults>
</compile_context>

<pallas_src>
import functools

import jax
import jax.numpy as jnp
from jax.experimental import pallas as pl
from jax.experimental.pallas import tpu as pltpu

_LN_EPS = 1e-5  # torch.nn.LayerNorm default eps


# ---------------------------------------------------------------------------
# Kernels
# ---------------------------------------------------------------------------
def _activation(h, neg_slope):
    if neg_slope == 0.0:
        return jnp.maximum(h, 0.0)                       # ReLU
    return jnp.where(h >= 0, h, neg_slope * h)           # LeakyReLU


def _finish(h, w2_ref, b2_ref, g_ref, beta_ref, o_ref, neg_slope):
    """activation -> Linear -> LayerNorm (all elementwise math in f32)."""
    h = _activation(h, neg_slope)
    y = jnp.dot(h.astype(jnp.bfloat16), w2_ref[...],
                preferred_element_type=jnp.float32) + b2_ref[...]
    mean = jnp.mean(y, axis=-1, keepdims=True)
    var = jnp.mean(jnp.square(y - mean), axis=-1, keepdims=True)
    yn = (y - mean) * jax.lax.rsqrt(var + _LN_EPS)
    o_ref[...] = (yn * g_ref[...] + beta_ref[...]).astype(o_ref.dtype)


def _mlp2_kernel(x_ref, w1_ref, b1_ref, w2_ref, b2_ref, g_ref, beta_ref, o_ref,
                 *, neg_slope):
    """Fused Linear -> act -> Linear -> LayerNorm over one row tile."""
    x = x_ref[...].astype(jnp.bfloat16)
    h = jnp.dot(x, w1_ref[...], preferred_element_type=jnp.float32) + b1_ref[...]
    _finish(h, w2_ref, b2_ref, g_ref, beta_ref, o_ref, neg_slope)


def _mlp2_cat_kernel(xa_ref, xb_ref, w1a_ref, w1b_ref, b1_ref,
                     w2_ref, b2_ref, g_ref, beta_ref, o_ref, *, neg_slope):
    """Same MLP but the first Linear of concat([xa, xb], axis=1) is split
    algebraically as xa @ W1a + xb @ W1b (no concat materialized in HBM)."""
    xa = xa_ref[...].astype(jnp.bfloat16)
    xb = xb_ref[...].astype(jnp.bfloat16)
    h = (jnp.dot(xa, w1a_ref[...], preferred_element_type=jnp.float32)
         + jnp.dot(xb, w1b_ref[...], preferred_element_type=jnp.float32)
         + b1_ref[...])
    _finish(h, w2_ref, b2_ref, g_ref, beta_ref, o_ref, neg_slope)


# ---------------------------------------------------------------------------
# Wrappers
# ---------------------------------------------------------------------------
def _pick_tm(m, cap=1024):
    """Row tile: as large as possible (<= cap) while keeping >= 2 grid steps
    when m allows it (megacore / step-overhead amortization), rounded to the
    8-sublane granularity."""
    m8 = ((m + 7) // 8) * 8
    if m8 <= 8:
        return 8
    half = ((pl.cdiv(m, 2) + 7) // 8) * 8
    return max(8, min(cap, half, m8))


def mlp2(x, params, *, neg_slope=0.0):
    """Pallas fused 2-layer MLP + LayerNorm over the rows of x."""
    w1, b1, w2, b2, gamma, beta = params
    m, d_in = x.shape
    hid = w1.shape[1]
    d_out = w2.shape[1]
    tm = _pick_tm(m)
    const = lambda i: (0, 0)

    return pl.pallas_call(
        functools.partial(_mlp2_kernel, neg_slope=neg_slope),
        out_shape=jax.ShapeDtypeStruct((m, d_out), jnp.float32),
        grid=(pl.cdiv(m, tm),),
        in_specs=[
            pl.BlockSpec((tm, d_in), lambda i: (i, 0)),   # x row tile
            pl.BlockSpec((d_in, hid), const),             # W1 (bf16, full)
            pl.BlockSpec((1, hid), const),                # b1
            pl.BlockSpec((hid, d_out), const),            # W2 (bf16, full)
            pl.BlockSpec((1, d_out), const),              # b2
            pl.BlockSpec((1, d_out), const),              # LN gamma
            pl.BlockSpec((1, d_out), const),              # LN beta
        ],
        out_specs=pl.BlockSpec((tm, d_out), lambda i: (i, 0)),
        compiler_params=pltpu.CompilerParams(
            dimension_semantics=("parallel",)),
    )(x, w1.astype(jnp.bfloat16), b1, w2.astype(jnp.bfloat16), b2, gamma, beta)


def mlp2_cat(xa, xb, params, *, neg_slope=0.0):
    """Pallas fused MLP on concat([xa, xb], axis=1) without materializing the
    concat: first-layer weights are split by rows and applied separately."""
    w1, b1, w2, b2, gamma, beta = params
    m, da = xa.shape
    mb, db = xb.shape
    assert m == mb
    hid = w1.shape[1]
    d_out = w2.shape[1]
    w1a = w1[:da].astype(jnp.bfloat16)
    w1b = w1[da:].astype(jnp.bfloat16)
    tm = _pick_tm(m)
    const = lambda i: (0, 0)

    return pl.pallas_call(
        functools.partial(_mlp2_cat_kernel, neg_slope=neg_slope),
        out_shape=jax.ShapeDtypeStruct((m, d_out), jnp.float32),
        grid=(pl.cdiv(m, tm),),
        in_specs=[
            pl.BlockSpec((tm, da), lambda i: (i, 0)),     # xa row tile
            pl.BlockSpec((tm, db), lambda i: (i, 0)),     # xb row tile
            pl.BlockSpec((da, hid), const),               # W1[:da]
            pl.BlockSpec((db, hid), const),               # W1[da:]
            pl.BlockSpec((1, hid), const),                # b1
            pl.BlockSpec((hid, d_out), const),            # W2
            pl.BlockSpec((1, d_out), const),              # b2
            pl.BlockSpec((1, d_out), const),              # LN gamma
            pl.BlockSpec((1, d_out), const),              # LN beta
        ],
        out_specs=pl.BlockSpec((tm, d_out), lambda i: (i, 0)),
        compiler_params=pltpu.CompilerParams(
            dimension_semantics=("parallel",)),
    )(xa, xb, w1a, w1b, b1, w2.astype(jnp.bfloat16), b2, gamma, beta)


def mlp2_xla(x, params, *, neg_slope=0.0):
    """Plain-XLA MLP for tiny row counts (global encoder, B ~ 2 rows):
    a pallas_call launch is pure overhead at that size."""
    w1, b1, w2, b2, gamma, beta = params
    h = x @ w1 + b1
    h = _activation(h, neg_slope)
    y = h @ w2 + b2
    mean = jnp.mean(y, axis=-1, keepdims=True)
    var = jnp.mean(jnp.square(y - mean), axis=-1, keepdims=True)
    return (y - mean) * jax.lax.rsqrt(var + _LN_EPS) * gamma + beta


def init_mlp_params(key, d_in, hidden, d_out):
    """Deterministic synthetic parameters (not a checkpoint)."""
    k1, k2, k3, k4 = jax.random.split(key, 4)
    w1 = jax.random.normal(k1, (d_in, hidden), jnp.float32) * 0.1
    b1 = jax.random.normal(k2, (1, hidden), jnp.float32) * 0.01
    w2 = jax.random.normal(k3, (hidden, d_out), jnp.float32) * 0.1
    b2 = jax.random.normal(k4, (1, d_out), jnp.float32) * 0.01
    gamma = jnp.ones((1, d_out), jnp.float32)
    beta = jnp.zeros((1, d_out), jnp.float32)
    return (w1, b1, w2, b2, gamma, beta)


def encoder_forward(node_attr, edge_attr, global_attr, batch, params,
                    *, encode_globals=True):
    """Mirrors Encoder.forward for the graph-batched case
       (node_attr is not None, batch is not None)."""
    # global encoder (ReLU MLP); B rows -> plain XLA (launch overhead otherwise)
    if encode_globals:
        global_attr_enc = mlp2_xla(global_attr, params["glob"], neg_slope=0.0)
    else:
        global_attr_enc = global_attr
    # node encoder: cat([node_attr, global_attr[batch]], dim=1) -> LeakyReLU MLP
    # (reference uses the RAW globals for the concat, not the encoded ones).
    # The concat is folded into the kernel; only the tiny [N, Fg] gather of the
    # raw globals happens in XLA.
    gathered_glob = global_attr[batch]
    node_attr_enc = mlp2_cat(node_attr, gathered_glob, params["node"],
                             neg_slope=0.01)               # LeakyReLU(0.01)
    # edge encoder (ReLU MLP)
    edge_attr_enc = mlp2(edge_attr, params["edge"], neg_slope=0.0)
    return node_attr_enc, edge_attr_enc, global_attr_enc


if __name__ == "__main__":
    # Small deterministic config:
    #   node_feature_dim=4, glob_feature_dim=4, edge_feature_dim=3
    #   node_enc_mlp_layers=[32], node_latent_dim=32
    #   edge_enc_mlp_layers=[32], edge_latent_dim=32
    #   glob_enc_mlp_layers=[32], glob_latent_dim=32
    #   encode_globals=True, dropout irrelevant at inference
    node_feature_dim, glob_feature_dim, edge_feature_dim = 4, 4, 3
    hidden, node_latent, edge_latent, glob_latent = 32, 32, 32, 32
    B, N, E = 2, 12, 20  # 2 graphs, 12 nodes, 20 edges

    key = jax.random.PRNGKey(0)
    kx, ke, kg, kp1, kp2, kp3 = jax.random.split(key, 6)

    node_attr = jax.random.normal(kx, (N, node_feature_dim), jnp.float32)
    edge_attr = jax.random.normal(ke, (E, edge_feature_dim), jnp.float32)
    global_attr = jax.random.normal(kg, (B, glob_feature_dim), jnp.float32)
    batch = jnp.concatenate(
        [jnp.zeros(N // 2, jnp.int32), jnp.ones(N - N // 2, jnp.int32)])

    params = {
        "node": init_mlp_params(kp1, node_feature_dim + glob_feature_dim,
                                hidden, node_latent),
        "edge": init_mlp_params(kp2, edge_feature_dim, hidden, edge_latent),
        "glob": init_mlp_params(kp3, glob_feature_dim, hidden, glob_latent),
    }

    n_enc, e_enc, g_enc = jax.jit(
        lambda na, ea, ga, b: encoder_forward(na, ea, ga, b, params)
    )(node_attr, edge_attr, global_attr, batch)
    jax.block_until_ready((n_enc, e_enc, g_enc))

    assert n_enc.shape == (N, node_latent)
    assert e_enc.shape == (E, edge_latent)
    assert g_enc.shape == (B, glob_latent)
    assert bool(jnp.all(jnp.isfinite(n_enc)))
    assert bool(jnp.all(jnp.isfinite(e_enc)))
    assert bool(jnp.all(jnp.isfinite(g_enc)))

    # Pure-JAX reference check for the Pallas paths (bf16 matmuls -> loose tol).
    w1, b1, w2, b2, g, bt = params["edge"]
    ref_e = mlp2_xla(edge_attr, params["edge"], neg_slope=0.0)
    assert bool(jnp.all(jnp.abs(ref_e - e_enc) < 5e-2))
    cat_in = jnp.concatenate([node_attr, global_attr[batch]], axis=1)
    ref_n = mlp2_xla(cat_in, params["node"], neg_slope=0.01)
    assert bool(jnp.all(jnp.abs(ref_n - n_enc) < 5e-2))

    print("KERNEL_OK")
</pallas_src>

<mosaic_0001>
module attributes {stable_mosaic.version = 11 : i64} {
  func.func @_mlp2_cat_kernel(%arg0: i32, %arg1: memref<8x4xf32, #tpu.memory_space<vmem>>, %arg2: memref<8x4xf32, #tpu.memory_space<vmem>>, %arg3: memref<4x32xbf16, #tpu.memory_space<vmem>>, %arg4: memref<4x32xbf16, #tpu.memory_space<vmem>>, %arg5: memref<1x32xf32, #tpu.memory_space<vmem>>, %arg6: memref<32x32xbf16, #tpu.memory_space<vmem>>, %arg7: memref<1x32xf32, #tpu.memory_space<vmem>>, %arg8: memref<1x32xf32, #tpu.memory_space<vmem>>, %arg9: memref<1x32xf32, #tpu.memory_space<vmem>>, %arg10: memref<8x32xf32, #tpu.memory_space<vmem>>) attributes {dimension_semantics = [#tpu.dimension_semantics<parallel>], iteration_bounds = array<i64: 2>, scalar_prefetch = 0 : i64, scratch_operands = 0 : i64, tpu.core_type = #tpu.core_type<tc>, window_params = [{transform_indices = @transform_0, window_bounds = array<i64: 8, 4>}, {transform_indices = @transform_1, window_bounds = array<i64: 8, 4>}, {pipeline_mode = #tpu.pipeline_mode<synchronous>, transform_indices = @transform_2, window_bounds = array<i64: 4, 32>}, {pipeline_mode = #tpu.pipeline_mode<synchronous>, transform_indices = @transform_3, window_bounds = array<i64: 4, 32>}, {pipeline_mode = #tpu.pipeline_mode<synchronous>, transform_indices = @transform_4, window_bounds = array<i64: 1, 32>}, {pipeline_mode = #tpu.pipeline_mode<synchronous>, transform_indices = @transform_5, window_bounds = array<i64: 32, 32>}, {pipeline_mode = #tpu.pipeline_mode<synchronous>, transform_indices = @transform_6, window_bounds = array<i64: 1, 32>}, {pipeline_mode = #tpu.pipeline_mode<synchronous>, transform_indices = @transform_7, window_bounds = array<i64: 1, 32>}, {pipeline_mode = #tpu.pipeline_mode<synchronous>, transform_indices = @transform_8, window_bounds = array<i64: 1, 32>}, {transform_indices = @transform_9, window_bounds = array<i64: 8, 32>}]} {
    %c0 = arith.constant 0 : index
    %c0_0 = arith.constant 0 : index
    %0 = vector.load %arg1[%c0, %c0_0] : memref<8x4xf32, #tpu.memory_space<vmem>>, vector<8x4xf32>
    %1 = arith.truncf %0 : vector<8x4xf32> to vector<8x4xbf16>
    %c0_1 = arith.constant 0 : index
    %c0_2 = arith.constant 0 : index
    %2 = vector.load %arg2[%c0_1, %c0_2] : memref<8x4xf32, #tpu.memory_space<vmem>>, vector<8x4xf32>
    %3 = arith.truncf %2 : vector<8x4xf32> to vector<8x4xbf16>
    %c0_3 = arith.constant 0 : index
    %c0_4 = arith.constant 0 : index
    %4 = vector.load %arg3[%c0_3, %c0_4] : memref<4x32xbf16, #tpu.memory_space<vmem>>, vector<4x32xbf16>
    %cst = arith.constant dense<0.000000e+00> : vector<8x32xf32>
    %5 = tpu.matmul %1, %4, %cst {dimension_numbers = #tpu.dot_dimension_numbers<[1], [0], [0], [1], [0, 0, 1, 1], [], []>} : vector<8x4xbf16>, vector<4x32xbf16>, vector<8x32xf32> -> vector<8x32xf32>
    %c0_5 = arith.constant 0 : index
    %c0_6 = arith.constant 0 : index
    %6 = vector.load %arg4[%c0_5, %c0_6] : memref<4x32xbf16, #tpu.memory_space<vmem>>, vector<4x32xbf16>
    %cst_7 = arith.constant dense<0.000000e+00> : vector<8x32xf32>
    %7 = tpu.matmul %3, %6, %cst_7 {dimension_numbers = #tpu.dot_dimension_numbers<[1], [0], [0], [1], [0, 0, 1, 1], [], []>} : vector<8x4xbf16>, vector<4x32xbf16>, vector<8x32xf32> -> vector<8x32xf32>
    %8 = arith.addf %5, %7 : vector<8x32xf32>
    %c0_8 = arith.constant 0 : index
    %c0_9 = arith.constant 0 : index
    %9 = vector.load %arg5[%c0_8, %c0_9] : memref<1x32xf32, #tpu.memory_space<vmem>>, vector<1x32xf32>
    %10 = vector.broadcast %9 : vector<1x32xf32> to vector<8x32xf32>
    %11 = arith.addf %8, %10 : vector<8x32xf32>
    %cst_10 = arith.constant 0.000000e+00 : f32
    %12 = vector.broadcast %cst_10 : f32 to vector<8x32xf32>
    %13 = arith.cmpf oge, %11, %12 : vector<8x32xf32>
    %cst_11 = arith.constant 0.00999999977 : f32
    %14 = vector.broadcast %cst_11 : f32 to vector<8x32xf32>
    %15 = arith.mulf %14, %11 : vector<8x32xf32>
    %16 = arith.select %13, %11, %15 : vector<8x32xi1>, vector<8x32xf32>
    %17 = arith.truncf %16 : vector<8x32xf32> to vector<8x32xbf16>
    %c0_12 = arith.constant 0 : index
    %c0_13 = arith.constant 0 : index
    %18 = vector.load %arg6[%c0_12, %c0_13] : memref<32x32xbf16, #tpu.memory_space<vmem>>, vector<32x32xbf16>
    %cst_14 = arith.constant dense<0.000000e+00> : vector<8x32xf32>
    %19 = tpu.matmul %17, %18, %cst_14 {dimension_numbers = #tpu.dot_dimension_numbers<[1], [0], [0], [1], [0, 0, 1, 1], [], []>} : vector<8x32xbf16>, vector<32x32xbf16>, vector<8x32xf32> -> vector<8x32xf32>
    %c0_15 = arith.constant 0 : index
    %c0_16 = arith.constant 0 : index
    %20 = vector.load %arg7[%c0_15, %c0_16] : memref<1x32xf32, #tpu.memory_space<vmem>>, vector<1x32xf32>
    %21 = vector.broadcast %20 : vector<1x32xf32> to vector<8x32xf32>
    %22 = arith.addf %19, %21 : vector<8x32xf32>
    %cst_17 = arith.constant dense<0.000000e+00> : vector<8xf32>
    %23 = vector.multi_reduction <add>, %22, %cst_17 [1] : vector<8x32xf32> to vector<8xf32>
    %24 = vector.shape_cast %23 : vector<8xf32> to vector<8x1xf32>
    %cst_18 = arith.constant 3.200000e+01 : f32
    %25 = vector.broadcast %cst_18 : f32 to vector<8x1xf32>
    %26 = arith.divf %24, %25 : vector<8x1xf32>
    %27 = vector.broadcast %26 : vector<8x1xf32> to vector<8x32xf32>
    %28 = arith.subf %22, %27 : vector<8x32xf32>
    %29 = arith.mulf %28, %28 : vector<8x32xf32>
    %cst_19 = arith.constant dense<0.000000e+00> : vector<8xf32>
    %30 = vector.multi_reduction <add>, %29, %cst_19 [1] : vector<8x32xf32> to vector<8xf32>
    %31 = vector.shape_cast %30 : vector<8xf32> to vector<8x1xf32>
    %cst_20 = arith.constant 3.200000e+01 : f32
    %32 = vector.broadcast %cst_20 : f32 to vector<8x1xf32>
    %33 = arith.divf %31, %32 : vector<8x1xf32>
    %34 = vector.broadcast %26 : vector<8x1xf32> to vector<8x32xf32>
    %35 = arith.subf %22, %34 : vector<8x32xf32>
    %cst_21 = arith.constant 9.99999974E-6 : f32
    %36 = vector.broadcast %cst_21 : f32 to vector<8x1xf32>
    %37 = arith.addf %33, %36 : vector<8x1xf32>
    %38 = math.rsqrt %37 : vector<8x1xf32>
    %39 = vector.broadcast %38 : vector<8x1xf32> to vector<8x32xf32>
    %40 = arith.mulf %35, %39 : vector<8x32xf32>
    %c0_22 = arith.constant 0 : index
    %c0_23 = arith.constant 0 : index
    %41 = vector.load %arg8[%c0_22, %c0_23] : memref<1x32xf32, #tpu.memory_space<vmem>>, vector<1x32xf32>
    %42 = vector.broadcast %41 : vector<1x32xf32> to vector<8x32xf32>
    %43 = arith.mulf %40, %42 : vector<8x32xf32>
    %c0_24 = arith.constant 0 : index
    %c0_25 = arith.constant 0 : index
    %44 = vector.load %arg9[%c0_24, %c0_25] : memref<1x32xf32, #tpu.memory_space<vmem>>, vector<1x32xf32>
    %45 = vector.broadcast %44 : vector<1x32xf32> to vector<8x32xf32>
    %46 = arith.addf %43, %45 : vector<8x32xf32>
    %c0_26 = arith.constant 0 : index
    %c0_27 = arith.constant 0 : index
    %47 = vector.load %arg10[%c0_26, %c0_27] : memref<8x32xf32, #tpu.memory_space<vmem>>, vector<8x32xf32>
    tpu.vector_store %arg10[%c0_26, %c0_27], %46 {strides = array<i32>} : memref<8x32xf32, #tpu.memory_space<vmem>>, vector<8x32xf32>,
    return
  }
  func.func @transform_0(%arg0: i32) -> (i32, i32) {
    %c0_i32 = arith.constant 0 : i32
    %c0_i32_0 = arith.constant 0 : i32
    return %arg0, %c0_i32 : i32, i32
  }
  func.func @transform_1(%arg0: i32) -> (i32, i32) {
    %c0_i32 = arith.constant 0 : i32
    %c0_i32_0 = arith.constant 0 : i32
    return %arg0, %c0_i32 : i32, i32
  }
  func.func @transform_2(%arg0: i32) -> (i32, i32) {
    %c0_i32 = arith.constant 0 : i32
    %c0_i32_0 = arith.constant 0 : i32
    %c0_i32_1 = arith.constant 0 : i32
    return %c0_i32, %c0_i32_0 : i32, i32
  }
  func.func @transform_3(%arg0: i32) -> (i32, i32) {
    %c0_i32 = arith.constant 0 : i32
    %c0_i32_0 = arith.constant 0 : i32
    %c0_i32_1 = arith.constant 0 : i32
    return %c0_i32, %c0_i32_0 : i32, i32
  }
  func.func @transform_4(%arg0: i32) -> (i32, i32) {
    %c0_i32 = arith.constant 0 : i32
    %c0_i32_0 = arith.constant 0 : i32
    %c0_i32_1 = arith.constant 0 : i32
    return %c0_i32, %c0_i32_0 : i32, i32
  }
  func.func @transform_5(%arg0: i32) -> (i32, i32) {
    %c0_i32 = arith.constant 0 : i32
    %c0_i32_0 = arith.constant 0 : i32
    %c0_i32_1 = arith.constant 0 : i32
    return %c0_i32, %c0_i32_0 : i32, i32
  }
  func.func @transform_6(%arg0: i32) -> (i32, i32) {
    %c0_i32 = arith.constant 0 : i32
    %c0_i32_0 = arith.constant 0 : i32
    %c0_i32_1 = arith.constant 0 : i32
    return %c0_i32, %c0_i32_0 : i32, i32
  }
  func.func @transform_7(%arg0: i32) -> (i32, i32) {
    %c0_i32 = arith.constant 0 : i32
    %c0_i32_0 = arith.constant 0 : i32
    %c0_i32_1 = arith.constant 0 : i32
    return %c0_i32, %c0_i32_0 : i32, i32
  }
  func.func @transform_8(%arg0: i32) -> (i32, i32) {
    %c0_i32 = arith.constant 0 : i32
    %c0_i32_0 = arith.constant 0 : i32
    %c0_i32_1 = arith.constant 0 : i32
    return %c0_i32, %c0_i32_0 : i32, i32
  }
  func.func @transform_9(%arg0: i32) -> (i32, i32) {
    %c0_i32 = arith.constant 0 : i32
    %c0_i32_0 = arith.constant 0 : i32
    return %arg0, %c0_i32 : i32, i32
  }
}

module attributes {stable_mosaic.version = 11 : i64} {
  func.func @_mlp2_kernel(%arg0: i32, %arg1: memref<16x3xf32, #tpu.memory_space<vmem>>, %arg2: memref<3x32xbf16, #tpu.memory_space<vmem>>, %arg3: memref<1x32xf32, #tpu.memory_space<vmem>>, %arg4: memref<32x32xbf16, #tpu.memory_space<vmem>>, %arg5: memref<1x32xf32, #tpu.memory_space<vmem>>, %arg6: memref<1x32xf32, #tpu.memory_space<vmem>>, %arg7: memref<1x32xf32, #tpu.memory_space<vmem>>, %arg8: memref<16x32xf32, #tpu.memory_space<vmem>>) attributes {dimension_semantics = [#tpu.dimension_semantics<parallel>], iteration_bounds = array<i64: 2>, scalar_prefetch = 0 : i64, scratch_operands = 0 : i64, tpu.core_type = #tpu.core_type<tc>, window_params = [{transform_indices = @transform_0, window_bounds = array<i64: 16, 3>}, {pipeline_mode = #tpu.pipeline_mode<synchronous>, transform_indices = @transform_1, window_bounds = array<i64: 3, 32>}, {pipeline_mode = #tpu.pipeline_mode<synchronous>, transform_indices = @transform_2, window_bounds = array<i64: 1, 32>}, {pipeline_mode = #tpu.pipeline_mode<synchronous>, transform_indices = @transform_3, window_bounds = array<i64: 32, 32>}, {pipeline_mode = #tpu.pipeline_mode<synchronous>, transform_indices = @transform_4, window_bounds = array<i64: 1, 32>}, {pipeline_mode = #tpu.pipeline_mode<synchronous>, transform_indices = @transform_5, window_bounds = array<i64: 1, 32>}, {pipeline_mode = #tpu.pipeline_mode<synchronous>, transform_indices = @transform_6, window_bounds = array<i64: 1, 32>}, {transform_indices = @transform_7, window_bounds = array<i64: 16, 32>}]} {
    %c0 = arith.constant 0 : index
    %c0_0 = arith.constant 0 : index
    %0 = vector.load %arg1[%c0, %c0_0] : memref<16x3xf32, #tpu.memory_space<vmem>>, vector<16x3xf32>
    %1 = arith.truncf %0 : vector<16x3xf32> to vector<16x3xbf16>
    %c0_1 = arith.constant 0 : index
    %c0_2 = arith.constant 0 : index
    %2 = vector.load %arg2[%c0_1, %c0_2] : memref<3x32xbf16, #tpu.memory_space<vmem>>, vector<3x32xbf16>
    %cst = arith.constant dense<0.000000e+00> : vector<16x32xf32>
    %3 = tpu.matmul %1, %2, %cst {dimension_numbers = #tpu.dot_dimension_numbers<[1], [0], [0], [1], [0, 0, 1, 1], [], []>} : vector<16x3xbf16>, vector<3x32xbf16>, vector<16x32xf32> -> vector<16x32xf32>
    %c0_3 = arith.constant 0 : index
    %c0_4 = arith.constant 0 : index
    %4 = vector.load %arg3[%c0_3, %c0_4] : memref<1x32xf32, #tpu.memory_space<vmem>>, vector<1x32xf32>
    %5 = vector.broadcast %4 : vector<1x32xf32> to vector<16x32xf32>
    %6 = arith.addf %3, %5 : vector<16x32xf32>
    %cst_5 = arith.constant 0.000000e+00 : f32
    %7 = vector.broadcast %cst_5 : f32 to vector<16x32xf32>
    %8 = arith.maximumf %6, %7 : vector<16x32xf32>
    %9 = arith.truncf %8 : vector<16x32xf32> to vector<16x32xbf16>
    %c0_6 = arith.constant 0 : index
    %c0_7 = arith.constant 0 : index
    %10 = vector.load %arg4[%c0_6, %c0_7] : memref<32x32xbf16, #tpu.memory_space<vmem>>, vector<32x32xbf16>
    %cst_8 = arith.constant dense<0.000000e+00> : vector<16x32xf32>
    %11 = tpu.matmul %9, %10, %cst_8 {dimension_numbers = #tpu.dot_dimension_numbers<[1], [0], [0], [1], [0, 0, 1, 1], [], []>} : vector<16x32xbf16>, vector<32x32xbf16>, vector<16x32xf32> -> vector<16x32xf32>
    %c0_9 = arith.constant 0 : index
    %c0_10 = arith.constant 0 : index
    %12 = vector.load %arg5[%c0_9, %c0_10] : memref<1x32xf32, #tpu.memory_space<vmem>>, vector<1x32xf32>
    %13 = vector.broadcast %12 : vector<1x32xf32> to vector<16x32xf32>
    %14 = arith.addf %11, %13 : vector<16x32xf32>
    %cst_11 = arith.constant dense<0.000000e+00> : vector<16xf32>
    %15 = vector.multi_reduction <add>, %14, %cst_11 [1] : vector<16x32xf32> to vector<16xf32>
    %16 = vector.shape_cast %15 : vector<16xf32> to vector<16x1xf32>
    %cst_12 = arith.constant 3.200000e+01 : f32
    %17 = vector.broadcast %cst_12 : f32 to vector<16x1xf32>
    %18 = arith.divf %16, %17 : vector<16x1xf32>
    %19 = vector.broadcast %18 : vector<16x1xf32> to vector<16x32xf32>
    %20 = arith.subf %14, %19 : vector<16x32xf32>
    %21 = arith.mulf %20, %20 : vector<16x32xf32>
    %cst_13 = arith.constant dense<0.000000e+00> : vector<16xf32>
    %22 = vector.multi_reduction <add>, %21, %cst_13 [1] : vector<16x32xf32> to vector<16xf32>
    %23 = vector.shape_cast %22 : vector<16xf32> to vector<16x1xf32>
    %cst_14 = arith.constant 3.200000e+01 : f32
    %24 = vector.broadcast %cst_14 : f32 to vector<16x1xf32>
    %25 = arith.divf %23, %24 : vector<16x1xf32>
    %26 = vector.broadcast %18 : vector<16x1xf32> to vector<16x32xf32>
    %27 = arith.subf %14, %26 : vector<16x32xf32>
    %cst_15 = arith.constant 9.99999974E-6 : f32
    %28 = vector.broadcast %cst_15 : f32 to vector<16x1xf32>
    %29 = arith.addf %25, %28 : vector<16x1xf32>
    %30 = math.rsqrt %29 : vector<16x1xf32>
    %31 = vector.broadcast %30 : vector<16x1xf32> to vector<16x32xf32>
    %32 = arith.mulf %27, %31 : vector<16x32xf32>
    %c0_16 = arith.constant 0 : index
    %c0_17 = arith.constant 0 : index
    %33 = vector.load %arg6[%c0_16, %c0_17] : memref<1x32xf32, #tpu.memory_space<vmem>>, vector<1x32xf32>
    %34 = vector.broadcast %33 : vector<1x32xf32> to vector<16x32xf32>
    %35 = arith.mulf %32, %34 : vector<16x32xf32>
    %c0_18 = arith.constant 0 : index
    %c0_19 = arith.constant 0 : index
    %36 = vector.load %arg7[%c0_18, %c0_19] : memref<1x32xf32, #tpu.memory_space<vmem>>, vector<1x32xf32>
    %37 = vector.broadcast %36 : vector<1x32xf32> to vector<16x32xf32>
    %38 = arith.addf %35, %37 : vector<16x32xf32>
    %c0_20 = arith.constant 0 : index
    %c0_21 = arith.constant 0 : index
    %39 = vector.load %arg8[%c0_20, %c0_21] : memref<16x32xf32, #tpu.memory_space<vmem>>, vector<16x32xf32>
    tpu.vector_store %arg8[%c0_20, %c0_21], %38 {strides = array<i32>} : memref<16x32xf32, #tpu.memory_space<vmem>>, vector<16x32xf32>,
    return
  }
  func.func @transform_0(%arg0: i32) -> (i32, i32) {
    %c0_i32 = arith.constant 0 : i32
    %c0_i32_0 = arith.constant 0 : i32
    return %arg0, %c0_i32 : i32, i32
  }
  func.func @transform_1(%arg0: i32) -> (i32, i32) {
    %c0_i32 = arith.constant 0 : i32
    %c0_i32_0 = arith.constant 0 : i32
    %c0_i32_1 = arith.constant 0 : i32
    return %c0_i32, %c0_i32_0 : i32, i32
  }
  func.func @transform_2(%arg0: i32) -> (i32, i32) {
    %c0_i32 = arith.constant 0 : i32
    %c0_i32_0 = arith.constant 0 : i32
    %c0_i32_1 = arith.constant 0 : i32
    return %c0_i32, %c0_i32_0 : i32, i32
  }
  func.func @transform_3(%arg0: i32) -> (i32, i32) {
    %c0_i32 = arith.constant 0 : i32
    %c0_i32_0 = arith.constant 0 : i32
    %c0_i32_1 = arith.constant 0 : i32
    return %c0_i32, %c0_i32_0 : i32, i32
  }
  func.func @transform_4(%arg0: i32) -> (i32, i32) {
    %c0_i32 = arith.constant 0 : i32
    %c0_i32_0 = arith.constant 0 : i32
    %c0_i32_1 = arith.constant 0 : i32
    return %c0_i32, %c0_i32_0 : i32, i32
  }
  func.func @transform_5(%arg0: i32) -> (i32, i32) {
    %c0_i32 = arith.constant 0 : i32
    %c0_i32_0 = arith.constant 0 : i32
    %c0_i32_1 = arith.constant 0 : i32
    return %c0_i32, %c0_i32_0 : i32, i32
  }
  func.func @transform_6(%arg0: i32) -> (i32, i32) {
    %c0_i32 = arith.constant 0 : i32
    %c0_i32_0 = arith.constant 0 : i32
    %c0_i32_1 = arith.constant 0 : i32
    return %c0_i32, %c0_i32_0 : i32, i32
  }
  func.func @transform_7(%arg0: i32) -> (i32, i32) {
    %c0_i32 = arith.constant 0 : i32
    %c0_i32_0 = arith.constant 0 : i32
    return %arg0, %c0_i32 : i32, i32
  }
}

</mosaic_0001>

<bundles_post_ra>
// kernel: _lambda_.3
= control target key start
LH: loop header
LB: loop body
LE: loop exit
PB: predicated region body
PF: predicated region fallthrough
CT: control target
= control target key end

     0   :  { %12 = vsyncpa [#allocation3], 0  ;;  %s879_s0 = inlined_call_operand.vmem [shape: f32[20,3], index: 0, kind: input, shape index: {}]   ;;  %s880_s1 = inlined_call_operand.vmem [shape: bf16[3,32], index: 1, kind: input, shape index: {}]   ;;  %s881_s2 = inlined_call_operand.vmem [shape: f32[1,32], index: 2, kind: input, shape index: {}]   ;;  %s882_s3 = inlined_call_operand.vmem [shape: bf16[32,32], index: 3, kind: input, shape index: {}]   ;;  %s883_s4 = inlined_call_operand.vmem [shape: f32[1,32], index: 4, kind: input, shape index: {}]   ;;  %s884_s5 = inlined_call_operand.vmem [shape: f32[1,32], index: 5, kind: input, shape index: {}]   ;;  %s885_s6 = inlined_call_operand.vmem [shape: f32[1,32], index: 6, kind: input, shape index: {}]   ;;  %s886_s7 = inlined_call_operand.hbm [shape: f32[20,32], index: 7, kind: output, shape index: {}]  }
   0x1   :  { %14 = vsyncpa [#allocation3 + $0x1], 0  ;;  %s730_s24 = smov 0   ;;  %s732_s25 = smov 0  }
   0x2   :  { %s734_s26 = smov 0   ;;  %s736_s27 = smov 0  }
   0x3 LB: > { %s751_s28 = sadd.s32 4294967295, %s683_s27   ;;  %s529_s29 = sadd.s32 4294967294, %s683_s27   ;;  %s683_s27 = sphi %s736_s27, %s895_s27   ;;  %s679_s26 = sphi %s734_s26, %s894_s26   ;;  %s675_s25 = sphi %s732_s25, %s893_s25   ;;  %s671_s24 = sphi %s730_s24, %s892_s24  }
   0x4   : > { %s755_s30 = sadd.s32 1, %s683_s27   ;;  %s179_s8 = sadd.s32 1, %s679_s26 }
   0x5   : > { %s176_s9 = ssub.s32 %s683_s27, %s755_s30  ;;  %p189_p0 = scmp.ne.s32.totalorder %s679_s26, %s675_s25 }
   0x6   : > { %p177_p1 = scmp.eq.s32.totalorder %s176_s9, 0  ;;  %p190_p2 = scmp.eq.s32.totalorder %s751_s28, 1 }
   0x7   : > { %p195_p3 = scmp.ne.s32.totalorder %s675_s25, %s671_s24  ;;  %p196_p4 = scmp.eq.s32.totalorder %s529_s29, 1 }
   0x8   : > { %s766_s10 = scalar_select %p177_p1, %s679_s26, %s179_s8  }
   0x9   : > { %p768_p5 = por %p190_p2, %p189_p0  ;;  %p772_p6 = por %p196_p4, %p195_p3 }
   0xa   : > { %p532_p7 = scmp.ge.s32.totalorder %s683_s27, 1  ;;  %p249_p8 = scmp.lt.s32.totalorder %s683_s27, 3 }
   0xc   : > { %p250_p9 = pnand %p532_p7, %p249_p8 }
   0xd   : > { %s782_s15 = sshll.u32 (!%p250_p9), %s751_s28, 1 }
   0xe   : > { %253 = sbr.rel (%p250_p9) target bundleno = 604 (0x25c), region = 48  ;;  %p290_p10 = scmp.lt.s32.totalorder (!%p250_p9), %s782_s15, 2 }
  0x13   : > { %v308_v0 = vld [vmem:[%s880_s1] sm:$0x3]  ;;  %vm317_vm0 = vcmask 1040384   ;;  %vm318_vm1 = vcmask 1041408   ;;  %v685_v1 = vmov 65535   ;;  %s291_s16 = scalar_select %p290_p10, %s782_s15, 2 }
  0x14   : > { %v319_v2 = vsel %vm317_vm0, 4294967295, %v685_v1  ;;  %vm313_vm2 = vcmask 23552   ;;  %v556_v8 = vld [vmem:[%s882_s3 + $0x8] sm:$0xff]  ;;  %v555_v9 = vld [vmem:[%s882_s3] sm:$0xff]  ;;  %vm361_vm3 = vcmask 261120   ;;  %v686_v25 = vmov 32.0  }
  0x15   : > { %v320_v3 = vsel %vm318_vm1, %v319_v2, 0  ;;  %s535_s17 = sshll.u32 %s291_s16, 3  ;;  %371 = vmatpush.bf16.msra.mxu1 %v556_v8  ;;  %v600_v11 = vld [vmem:[%s881_s2] ss:$0 sm:$0xff]  ;;  %604 = vrcp.f32 %v686_v25  ;;  %s282_s16 = sand.u32 1, %s675_s25  }
  0x16   : > { %v322_v4 = vand.u32 %v320_v3, %v308_v0  ;;  %s293_s20 = scalar_lea.vmem %s879_s0, %s535_s17  ;;  %v601_v18 = vld [vmem:[%s883_s4] ss:$0 sm:$0xff]  ;;  %s533_s21 = sshll.u32 %s282_s16, 4 }
  0x17   : > { %v305_v5 = vld [vmem:[%s293_s20] sm:$0xff]  ;;  %v306_v6 = vld [vmem:[%s293_s20 + $0x8] sm:$0xff]  ;;  %s284_s22 = scalar_lea.vmem [#allocation2], %s533_s21  ;;  %s819_s23 = scalar_lea.sflag [#allocation3], %s282_s16 }
  0x18   : > { %331 = vmatpush.bf16.msra.mxu0 %v322_v4  ;;  %v307_v7 = vpack.c.bf16 %v306_v6, %v305_v5  ;;  %v602_v56 = vld [vmem:[%s884_s5] ss:$0 sm:$0xff]  ;;  %s453_s29 = ssub.s32 (%p768_p5), 3, %s782_s15 }
  0x19   : > { %372 = vmatpush.bf16.msra.mxu1 %v555_v9  ;;  %v603_v59 = vld [vmem:[%s885_s6] ss:$0 sm:$0xff]  ;;  %p454_p11 = scmp.lt.s32.totalorder (%p768_p5), %s453_s29, 2 }
  0x1b   : > { %536 = vmatmul.msk.bf16.vlgmr.msra.gmra.mxu0 %vm313_vm2, %v307_v7  ;;  %v605_v26 = vpop.eup %604 }
  0x1c   : > { %v386_v27 = vmul.f32 32.0, %v605_v26  ;;  %vm390_vm4 = vweird.f32 %v605_v26 }
  0x1e   : > { %v387_v28 = vsub.f32 1.0, %v386_v27 }
  0x20   : > { %v388_v29 = vmul.f32 %v605_v26, %v387_v28 }
  0x22   : > { %v389_v30 = vadd.f32 %v605_v26, %v388_v29 }
  0x24   : > { %v391_v31 = vsel %vm390_vm4, %v605_v26, %v389_v30 }
  0x98   : > { %v333_v10 = vpop.f32.mrf.mxu0 }
  0x99   : > { %v334_v12 = vadd.f32 %v600_v11, %v333_v10 }
  0x9b   : > { %v338_v15 = vmax.f32 %v334_v12, 0.0 }
  0xa0   : > { %v335_v13 = vpop.f32.mrf.mxu0 }
  0xa1   : > { %v336_v14 = vadd.f32 %v600_v11, %v335_v13 }
  0xa3   : > { %v339_v16 = vmax.f32 %v336_v14, 0.0 }
  0xa5   : > { %v340_v17 = vpack.c.bf16 %v339_v16, %v338_v15 }
  0xa7   : > { %545 = vmatmul.msk.bf16.vlgmr.msra.gmra.mxu1 %vm361_vm3, %v340_v17 }
 0x124   : > { %v374_v19 = vpop.f32.mrf.mxu1 }
 0x125   : > { %v375_v20 = vadd.f32 %v601_v18, %v374_v19 }
 0x127   : > { %v379_v21 = vsel %vm361_vm3, %v375_v20, 0.0 }
 0x128   : > { %380 = vadd.xlane.f32.xlu0 %v379_v21 }
 0x12c   : > { %v376_v22 = vpop.f32.mrf.mxu1 }
 0x12d   : > { %v377_v23 = vadd.f32 %v601_v18, %v376_v22 }
 0x12f   : > { %v382_v24 = vsel %vm361_vm3, %v377_v23, 0.0 }
 0x130   : > { %383 = vadd.xlane.f32.xlu0 %v382_v24 }
 0x19b   : > { %v381_v32 = vpop.xlane.xlu0 %380 }
 0x19c   : > { %v392_v33 = vmul.f32 %v391_v31, %v381_v32 }
 0x19e   : > { %v394_v34 = vsub.f32 %v375_v20, %v392_v33 }
 0x1a0   : > { %v396_v35 = vmul.f32 %v394_v34, %v394_v34 }
 0x1a2   : > { %v398_v36 = vsel %vm361_vm3, %v396_v35, 0.0 }
 0x1a3   : > { %399 = vadd.xlane.f32.xlu1 %v398_v36  ;;  %v384_v37 = vpop.xlane.xlu0 %383 }
 0x1a4   : > { %v393_v38 = vmul.f32 %v391_v31, %v384_v37 }
 0x1a6   : > { %v395_v39 = vsub.f32 %v377_v23, %v393_v38 }
 0x1a8   : > { %v397_v40 = vmul.f32 %v395_v39, %v395_v39 }
 0x1aa   : > { %v401_v41 = vsel %vm361_vm3, %v397_v40, 0.0 }
 0x1ab   : > { %402 = vadd.xlane.f32.xlu1 %v401_v41 }
 0x216   : > { %v400_v42 = vpop.xlane.xlu1 %399 }
 0x217   : > { %v404_v43 = vmul.f32 %v400_v42, %v391_v31 }
 0x219   : > { %v406_v44 = vadd.f32 1e-05, %v404_v43 }
 0x21b   : > { %606 = vrsqrt.f32 %v406_v44  ;;  %vm414_vm6 = vweird.f32 %v406_v44 }
 0x21e   : > { %v403_v45 = vpop.xlane.xlu1 %402 }
 0x21f   : > { %v405_v46 = vmul.f32 %v403_v45, %v391_v31 }
 0x221   : > { %v607_v47 = vpop.eup %606  ;;  %v407_v48 = vadd.f32 1e-05, %v405_v46 }
 0x222   : > { %v409_v49 = vmul.f32 %v607_v47, %v406_v44  ;;  %vm415_vm5 = vweird.f32 %v607_v47 }
 0x223   : > { %608 = vrsqrt.f32 %v407_v48  ;;  %vm416_vm7 = vmor %vm414_vm6, %vm415_vm5  ;;  %vm424_vm9 = vweird.f32 %v407_v48 }
 0x224   : > { %v410_v50 = vmul.f32 %v607_v47, %v409_v49 }
 0x226   : > { %v411_v51 = vmul.f32 0.5, %v410_v50 }
 0x228   : > { %v412_v52 = vsub.f32 1.5, %v411_v51 }
 0x229   : > { %v609_v53 = vpop.eup %608 }
 0x22a   : > { %v413_v54 = vmul.f32 %v607_v47, %v412_v52  ;;  %v419_v55 = vmul.f32 %v609_v53, %v407_v48  ;;  %vm425_vm8 = vweird.f32 %v609_v53 }
 0x22b   : > { %vm426_vm10 = vmor %vm424_vm9, %vm425_vm8 }
 0x22c   : > { %v417_v57 = vsel %vm416_vm7, %v607_v47, %v413_v54  ;;  %v420_v58 = vmul.f32 %v609_v53, %v419_v55 }
 0x22d   : > { %v428_v60 = vmul.f32 %v417_v57, %v394_v34 }
 0x22e   : > { %v421_v61 = vmul.f32 0.5, %v420_v58 }
 0x22f   : > { %v434_v62 = vmul.f32 %v602_v56, %v428_v60 }
 0x230   : > { %v422_v63 = vsub.f32 1.5, %v421_v61 }
 0x231   : > { %v440_v0 = vadd.f32 %v603_v59, %v434_v62 }
 0x232   : > { %v423_v1 = vmul.f32 %v609_v53, %v422_v63 }
 0x233   : > { %442 = vst.msk [vmem:[%s284_s22] sm:$0xff] %vm361_vm3, %v440_v0 }
 0x234   : > { %v427_v2 = vsel %vm426_vm10, %v609_v53, %v423_v1 }
 0x235   : > { %v429_v3 = vmul.f32 %v427_v2, %v395_v39 }
 0x237   : > { %v435_v4 = vmul.f32 %v602_v56, %v429_v3  ;;  %451 = sbr.rel (!%p768_p5) target bundleno = 604 (0x25c), region = 52 }
 0x239   : > { %v441_v5 = vadd.f32 %v603_v59, %v435_v4 }
 0x23b   : > { %443 = vst.msk [vmem:[%s284_s22 + $0x8] sm:$0xff] %vm361_vm3, %v441_v5 }
 0x23c   : > { %s897_s29 = smov (!%p454_p11, %s453_s29), 2 }
 0x23d   : > { %s548_s8 = sshll.u32 %s897_s29, 3 }
 0x23e   : > { %s457_s9 = ssub.s32 16, %s548_s8 }
 0x23f   : > { %s458_s13 = sshll.u32 %s457_s9, 4 }
 0x240   : > { %459 = vsyncadd %s819_s23, %s458_s13  ;;  %p828_p12 = scmp.ne.s32.totalorder %s548_s8, 0  ;;  %s557_s11 = sshll.u32 %s751_s28, 4 }
 0x241   : > { %s462_s15 = scalar_lea.hbm %s886_s7, %s557_s11  ;;  %s464_s18 = sshll.u32 %s284_s22, 4  ;;  %s836_s18 = int_to_ptr.vmem [resolvable:$true] %s464_s18 }
 0x242   : > { %s466_s19 = sshll.u32 %s462_s15, 4  ;;  %s887_s20 = sshll.u32 %s897_s29, 7  ;;  %s838_s19 = int_to_ptr.hbm [resolvable:$true] %s466_s19 }
 0x243   : > { %s610_s21 = sshra.s32 %s836_s18, 4  ;;  %s612_s8 = sshrl.u32 %s887_s20, 4  ;;  %s611_s21 = int_to_ptr.vmem [resolvable:$true] %s610_s21 }
 0x244   : > { %s617_s9 = scalar_lea.vmem %s611_s21, %s612_s8  ;;  %s687_s28 = smov [#allocation2]  }
 0x245   : > { %p618_p13 = scmp.ne.s32.totalorder %s611_s21, %s617_s9  ;;  %s621_s13 = scalar_lea.vmem %s687_s28, 32 }
 0x246   : > { %p623_p2 = scmp.lt.s32.totalorder %s621_s13, %s617_s9 }
 0x247   : > { %p619_p0 = pnand %p618_p13, %p828_p12 }
 0x249   : > { %p620_p1 = pneg %p619_p0 }
 0x24b   : > { %p625_p3 = pnand %p623_p2, %p620_p1 }
 0x24d   : > { %628 = shalt.err (!%p625_p3)
}
 0x24e   : > { %s629_s22 = sshra.s32 %s838_s19, 4  ;;  %s640_s15 = scalar_lea.hbm %s886_s7, 24  ;;  %s630_s22 = int_to_ptr.hbm [resolvable:$true] %s629_s22 }
 0x24f   : > { %s636_s11 = scalar_lea.hbm %s630_s22, %s612_s8  ;;  %p641_p8 = scmp.lt.s32.totalorder %s630_s22, %s886_s7 }
 0x250   : > { %p637_p4 = scmp.ne.s32.totalorder %s630_s22, %s636_s11  ;;  %p642_p9 = scmp.lt.s32.totalorder %s640_s15, %s636_s11 }
 0x252   : > { %p638_p5 = pnand %p637_p4, %p828_p12  ;;  %p643_p10 = por %p642_p9, %p641_p8 }
 0x254   : > { %p639_p7 = pneg %p638_p5 }
 0x256   : > { %p644_p11 = pnand %p643_p10, %p639_p7 }
 0x258   : > { %647 = shalt.err (!%p644_p11)
}
 0x259   : > { %s688_s9 = smov 128   ;;  %s689_s8 = smov 8  }
 0x25a   : > { %s891_s28 = sshll.u32 %s897_s29, 7 }
 0x25b   : > { %472 = dma.vmem_to_hbm [thread:$0]  (%p828_p12), %s836_s18, %s891_s28, %s838_s19, %s819_s23, %s688_s9, %s688_s9, %s689_s8  }
 0x25c PF: > { %p563_p13 = scmp.ge.s32.totalorder %s683_s27, 2  ;;  %s481_s20 = sand.u32 1, %s671_s24  }
 0x25d   : > { %s482_s13 = scalar_lea.sflag [#allocation3], %s481_s20 }
 0x25e   : > { %p560_p0 = pnand %p563_p13, %p772_p6 }
 0x260   : > { %p561_p1 = pneg %p560_p0 }
 0x262   : > { %666 = dma.done.wait (%p561_p1), %s482_s13, 256  }
 0x263   : > { %668 = vsyncadd (%p561_p1), %s482_s13, 4294967040  ;;  %p17_p2 = scmp.ge.s32.totalorder %s755_s30, 4   ;;  %s892_s24 = smov %s675_s25 }
 0x264   : > { %s893_s25 = smov %s679_s26  ;;  %s894_s26 = smov %s766_s10 }
 0x265   : > { %s895_s27 = smov %s755_s30  ;;  %19 = sbr.rel (!%p17_p2) target bundleno = 3 (0x3), region = 83 }
 0x26a   :  { %488 = vsyncpa [#allocation3], 1 }
 0x26b   :  { %490 = vsyncpa [#allocation3 + $0x1], 1 }

// kernel: _lambda_.2
= control target key start
LH: loop header
LB: loop body
LE: loop exit
PB: predicated region body
PF: predicated region fallthrough
CT: control target
= control target key end

     0   :  { %14 = vsyncpa [#allocation3], 0  ;;  %s868_s0 = inlined_call_operand.vmem [shape: f32[12,4], index: 0, kind: input, shape index: {}]   ;;  %s869_s1 = inlined_call_operand.vmem [shape: f32[12,4], index: 1, kind: input, shape index: {}]   ;;  %s870_s2 = inlined_call_operand.vmem [shape: bf16[4,32], index: 2, kind: input, shape index: {}]   ;;  %s871_s3 = inlined_call_operand.vmem [shape: bf16[4,32], index: 3, kind: input, shape index: {}]   ;;  %s872_s4 = inlined_call_operand.vmem [shape: f32[1,32], index: 4, kind: input, shape index: {}]   ;;  %s873_s5 = inlined_call_operand.vmem [shape: bf16[32,32], index: 5, kind: input, shape index: {}]   ;;  %s874_s6 = inlined_call_operand.vmem [shape: f32[1,32], index: 6, kind: input, shape index: {}]   ;;  %s875_s7 = inlined_call_operand.vmem [shape: f32[1,32], index: 7, kind: input, shape index: {}]   ;;  %s876_s8 = inlined_call_operand.vmem [shape: f32[1,32], index: 8, kind: input, shape index: {}]   ;;  %s877_s9 = inlined_call_operand.hbm [shape: f32[12,32], index: 9, kind: output, shape index: {}]  }
   0x1   :  { %16 = vsyncpa [#allocation3 + $0x1], 0  ;;  %s752_s30 = smov 0   ;;  %s754_s10 = smov 0  }
   0x2   :  { %s756_s11 = smov 0   ;;  %s758_s12 = smov 0  }
   0x3 LB: > { %s773_s13 = sadd.s32 4294967295, %s699_s12   ;;  %s565_s14 = sadd.s32 4294967294, %s699_s12   ;;  %s699_s12 = sphi %s758_s12, %s883_s12   ;;  %s695_s11 = sphi %s756_s11, %s882_s11   ;;  %s691_s10 = sphi %s754_s10, %s881_s10   ;;  %s687_s30 = sphi %s752_s30, %s880_s30  }
   0x4   : > { %s777_s15 = sadd.s32 1, %s699_s12   ;;  %s228_s16 = sadd.s32 1, %s695_s11 }
   0x5   : > { %s225_s17 = ssub.s32 %s699_s12, %s777_s15  ;;  %p238_p0 = scmp.ne.s32.totalorder %s695_s11, %s691_s10 }
   0x6   : > { %p226_p1 = scmp.eq.s32.totalorder %s225_s17, 0  ;;  %p239_p2 = scmp.eq.s32.totalorder %s773_s13, 1 }
   0x7   : > { %p244_p3 = scmp.ne.s32.totalorder %s691_s10, %s687_s30  ;;  %p245_p4 = scmp.eq.s32.totalorder %s565_s14, 1 }
   0x8   : > { %s788_s18 = scalar_select %p226_p1, %s695_s11, %s228_s16  }
   0x9   : > { %p790_p5 = por %p239_p2, %p238_p0  ;;  %p794_p6 = por %p245_p4, %p244_p3 }
   0xa   : > { %p568_p7 = scmp.ge.s32.totalorder %s699_s12, 1  ;;  %p298_p8 = scmp.lt.s32.totalorder %s699_s12, 3 }
   0xc   : > { %p299_p9 = pnand %p568_p7, %p298_p8 }
   0xd   : > { %p337_p10 = scmp.lt.s32.totalorder (!%p299_p9), %s773_s13, 1  ;;  %s584_s16 = sshll.u32 (!%p299_p9), %s773_s13, 3 }
   0xe   : > { %302 = sbr.rel (%p299_p9) target bundleno = 567 (0x237), region = 56  ;;  %s489_s24 = scalar_lea.hbm (!%p299_p9), %s877_s9, %s584_s16 }
   0xf   : > { %s493_s28 = sshll.u32 (!%p299_p9), %s489_s24, 4  ;;  %s494_s28 = int_to_ptr.hbm [resolvable:$true] %s493_s28 }
  0x10   : > { %s651_s21 = sshra.s32 (!%p299_p9), %s494_s28, 4  ;;  %s652_s21 = int_to_ptr.hbm [resolvable:$true] %s651_s21 }
  0x11   : > { %s653_s16 = scalar_lea.hbm (!%p299_p9), %s652_s21, 8  ;;  %p658_p0 = scmp.lt.s32.totalorder (!%p299_p9), %s652_s21, %s877_s9 }
  0x12   : > { %p654_p11 = scmp.ne.s32.totalorder (!%p299_p9), %s652_s21, %s653_s16 }
  0x13   : > { %v351_v0 = vld [vmem:[%s871_s3] sm:$0x3]  ;;  %vm356_vm0 = vcmask 1041408   ;;  %s338_s25 = scalar_select %p337_p10, %s773_s13, 1  ;;  %vm352_vm1 = vcmask 31744   ;;  %v588_v8 = vld [vmem:[%s873_s5 + $0x8] sm:$0xff] }
  0x14   : > { %v350_v1 = vld [vmem:[%s870_s2] sm:$0x3]  ;;  %v358_v2 = vsel %vm356_vm0, %v351_v0, 0  ;;  %431 = vmatpush.bf16.msra.mxu2 %v588_v8  ;;  %vm421_vm3 = vcmask 261120   ;;  %v701_v25 = vmov 32.0   ;;  %p655_p12 = pnand %p654_p11, %p790_p5 }
  0x15   : > { %v377_v3 = vsel %vm356_vm0, %v350_v1, 0  ;;  %367 = vmatpush.bf16.msra.mxu0 %v358_v2  ;;  %s570_s26 = sshll.u32 %s338_s25, 3  ;;  %v587_v9 = vld [vmem:[%s873_s5] sm:$0xff]  ;;  %633 = vrcp.f32 %v701_v25 }
  0x16   : > { %386 = vmatpush.bf16.msra.mxu1 %v377_v3  ;;  %s344_s29 = scalar_lea.vmem %s869_s1, %s570_s26  ;;  %s340_s17 = scalar_lea.vmem %s868_s0, %s570_s26  ;;  %v629_v10 = vld [vmem:[%s872_s4] ss:$0 sm:$0xff] }
  0x17   : > { %v348_v4 = vld [vmem:[%s344_s29] sm:$0xff]  ;;  %s334_s29 = sand.u32 1, %s691_s10   ;;  %p656_p13 = pneg %p655_p12 }
  0x18   : > { %v346_v5 = vld [vmem:[%s340_s17] sm:$0xff]  ;;  %v349_v6 = vpack.c.bf16 %v348_v4, %v348_v4  ;;  %432 = vmatpush.bf16.msra.mxu2 %v587_v9  ;;  %s569_s14 = sshll.u32 %s334_s29, 3  ;;  %s479_s17 = scalar_lea.sflag [#allocation3], %s334_s29 }
  0x19   : > { %v347_v7 = vpack.c.bf16 %v346_v5, %v346_v5  ;;  %v630_v20 = vld [vmem:[%s874_s6] ss:$0 sm:$0xff]  ;;  %s336_s26 = scalar_lea.vmem [#allocation2], %s569_s14  ;;  %s657_s14 = scalar_lea.hbm %s877_s9, 16 }
  0x1a   : > { %572 = vmatmul.msk.bf16.vlgmr.msra.gmra.mxu0 %vm352_vm1, %v349_v6  ;;  %v631_v46 = vld [vmem:[%s875_s7] ss:$0 sm:$0xff]  ;;  %s491_s13 = sshll.u32 %s336_s26, 4  ;;  %p659_p1 = scmp.lt.s32.totalorder %s657_s14, %s653_s16  ;;  %s492_s13 = int_to_ptr.vmem [resolvable:$true] %s491_s13 }
  0x1b   : > { %573 = vmatmul.msk.bf16.vlgmr.msra.gmra.mxu1 %vm352_vm1, %v347_v7  ;;  %v634_v26 = vpop.eup %633  ;;  %v632_v49 = vld [vmem:[%s876_s8] ss:$0 sm:$0xff] }
  0x1c   : > { %v442_v27 = vmul.f32 32.0, %v634_v26  ;;  %vm446_vm4 = vweird.f32 %v634_v26  ;;  %p660_p2 = por %p659_p1, %p658_p0 }
  0x1e   : > { %v443_v28 = vsub.f32 1.0, %v442_v27  ;;  %p661_p3 = pnand %p660_p2, %p656_p13 }
  0x20   : > { %v444_v29 = vmul.f32 %v634_v26, %v443_v28 }
  0x22   : > { %v445_v30 = vadd.f32 %v634_v26, %v444_v29 }
  0x24   : > { %v447_v31 = vsel %vm446_vm4, %v634_v26, %v445_v30 }
  0x97   : > { %v369_v11 = vpop.f32.mrf.mxu0 }
  0x98   : > { %v388_v12 = vpop.f32.mrf.mxu1 }
  0x99   : > { %v389_v13 = vadd.f32 %v388_v12, %v369_v11 }
  0x9b   : > { %v396_v14 = vadd.f32 %v629_v10, %v389_v13 }
  0x9d   : > { %v398_v15 = vmul.f32 0.01, %v396_v14  ;;  %vm397_vm2 = vcmp.ge.f32.partialorder %v396_v14, 0.0 }
  0x9f   : > { %v399_v16 = vsel %vm397_vm2, %v396_v14, %v398_v15  ;;  %v371_v17 = vpop.f32.mrf.mxu0 }
  0xa0   : > { %v390_v18 = vpop.f32.mrf.mxu1  ;;  %v400_v19 = vpack.c.bf16 %v399_v16, %v399_v16 }
  0xa2   : > { %582 = vmatmul.msk.bf16.vlgmr.msra.gmra.mxu2 %vm421_vm3, %v400_v19 }
 0x125   : > { %v434_v21 = vpop.f32.mrf.mxu2 }
 0x126   : > { %v435_v22 = vadd.f32 %v630_v20, %v434_v21 }
 0x128   : > { %v438_v23 = vsel %vm421_vm3, %v435_v22, 0.0 }
 0x129   : > { %439 = vadd.xlane.f32.xlu0 %v438_v23 }
 0x12d   : > { %v436_v24 = vpop.f32.mrf.mxu2 }
 0x19c   : > { %v440_v32 = vpop.xlane.xlu0 %439 }
 0x19d   : > { %v448_v33 = vmul.f32 %v447_v31, %v440_v32 }
 0x19f   : > { %v449_v34 = vsub.f32 %v435_v22, %v448_v33 }
 0x1a1   : > { %v450_v35 = vmul.f32 %v449_v34, %v449_v34 }
 0x1a3   : > { %v451_v36 = vsel %vm421_vm3, %v450_v35, 0.0 }
 0x1a4   : > { %452 = vadd.xlane.f32.xlu0 %v451_v36 }
 0x217   : > { %v453_v37 = vpop.xlane.xlu0 %452 }
 0x218   : > { %v454_v38 = vmul.f32 %v453_v37, %v447_v31 }
 0x21a   : > { %v455_v39 = vadd.f32 1e-05, %v454_v38 }
 0x21c   : > { %635 = vrsqrt.f32 %v455_v39  ;;  %vm462_vm6 = vweird.f32 %v455_v39 }
 0x222   : > { %v636_v40 = vpop.eup %635 }
 0x223   : > { %v457_v41 = vmul.f32 %v636_v40, %v455_v39  ;;  %vm463_vm5 = vweird.f32 %v636_v40 }
 0x224   : > { %vm464_vm7 = vmor %vm462_vm6, %vm463_vm5 }
 0x225   : > { %v458_v42 = vmul.f32 %v636_v40, %v457_v41 }
 0x227   : > { %v459_v43 = vmul.f32 0.5, %v458_v42 }
 0x229   : > { %v460_v44 = vsub.f32 1.5, %v459_v43 }
 0x22b   : > { %v461_v45 = vmul.f32 %v636_v40, %v460_v44 }
 0x22d   : > { %v465_v47 = vsel %vm464_vm7, %v636_v40, %v461_v45 }
 0x22e   : > { %v466_v48 = vmul.f32 %v465_v47, %v449_v34 }
 0x230   : > { %v471_v50 = vmul.f32 %v631_v46, %v466_v48 }
 0x232   : > { %v476_v51 = vadd.f32 %v632_v49, %v471_v50 }
 0x234   : > { %477 = vst.msk [vmem:[%s336_s26] sm:$0xff] %vm421_vm3, %v476_v51 }
 0x235   : > { %664 = shalt.err (!%p661_p3)
}
 0x236   : > { %589 = dma.vmem_to_hbm [thread:$0]  (%p790_p5), %s492_s13, 128, %s494_s28, %s479_s17  }
 0x237 PF: > { %p595_p4 = scmp.ge.s32.totalorder %s699_s12, 2  ;;  %s505_s29 = sand.u32 1, %s687_s30  }
 0x238   : > { %s506_s27 = scalar_lea.sflag [#allocation3], %s505_s29 }
 0x239   : > { %p592_p7 = pnand %p595_p4, %p794_p6 }
 0x23b   : > { %p593_p8 = pneg %p592_p7 }
 0x23d   : > { %682 = dma.done.wait (%p593_p8), %s506_s27, 128  }
 0x23e   : > { %684 = vsyncadd (%p593_p8), %s506_s27, 4294967168  ;;  %p19_p9 = scmp.ge.s32.totalorder %s777_s15, 4   ;;  %s880_s30 = smov %s691_s10 }
 0x23f   : > { %s881_s10 = smov %s695_s11  ;;  %s882_s11 = smov %s788_s18 }
 0x240   : > { %s883_s12 = smov %s777_s15  ;;  %21 = sbr.rel (!%p19_p9) target bundleno = 3 (0x3), region = 94 }
 0x245   :  { %512 = vsyncpa [#allocation3], 1 }
 0x246   :  { %514 = vsyncpa [#allocation3 + $0x1], 1 }

</bundles_post_ra>
